<compile_context>
chip_gen: v7x
topology: tpu7x:2x2x1
jax: 0.10.0
libtpu: 0.0.40
codegen_flags: <defaults>
</compile_context>

<pallas_src>
import jax
import jax.numpy as jnp
from jax.experimental import pallas as pl
from jax.experimental.pallas import tpu as pltpu


def _round_up(x, m):
    return (x + m - 1) // m * m


def _ex2net_kernel(x_ref, w1_ref, b1_ref, w2_ref, b2_ref, o_ref):
    # x tile arrives f32; cast to bf16 in-kernel (single HBM pass over x).
    x = x_ref[...].astype(jnp.bfloat16)
    # hidden = relu(x @ W1 + b1)   (bf16 MXU, f32 accumulation)
    h = jnp.dot(x, w1_ref[...], preferred_element_type=jnp.float32)
    h = jnp.maximum(h + b1_ref[...], 0.0)            # bias/ReLU in f32 (v5e-safe)
    # out = relu(h @ W2 + b2)
    o = jnp.dot(h.astype(jnp.bfloat16), w2_ref[...],
                preferred_element_type=jnp.float32)
    o_ref[...] = jnp.maximum(o + b2_ref[...], 0.0).astype(o_ref.dtype)


def prepare_params(w1, b1, w2, b2):
    """One-time weight/bias prep: pad feature dims to lane width, cast to bf16.

    w1: (784, H), b1: (H,), w2: (H, N), b2: (N,)  — all float32.
    Zero padding is mathematically inert through the ReLUs.
    """
    K, H = w1.shape
    N = w2.shape[1]
    Hp = _round_up(max(H, 128), 128)    # 10  -> 128
    Np = _round_up(max(N, 128), 128)    # 10  -> 128
    w1p = jnp.zeros((K, Hp), jnp.bfloat16).at[:, :H].set(w1.astype(jnp.bfloat16))
    b1p = jnp.zeros((1, Hp), jnp.float32).at[0, :H].set(b1)
    w2p = jnp.zeros((Hp, Np), jnp.bfloat16).at[:H, :N].set(w2.astype(jnp.bfloat16))
    b2p = jnp.zeros((1, Np), jnp.float32).at[0, :N].set(b2)
    return (w1p, b1p, w2p, b2p), N


def ex2net_forward(x_nchw, padded_params, n_out, *, block_rows=1024):
    """Ex2Net forward pass as a single batch-tiled Pallas kernel.

    x_nchw:        (B, 1, 28, 28) float32  (PyTorch NCHW convention)
    padded_params: output of prepare_params (bf16 weights, f32 biases)
    n_out:         true number of output classes (10)
    returns        (B, n_out) float32
    """
    w1p, b1p, w2p, b2p = padded_params
    B = x_nchw.shape[0]
    K = w1p.shape[0]          # 784 (unpadded contraction dim)
    Hp = w1p.shape[1]         # 128
    Np = w2p.shape[1]         # 128

    # Reshape only — no copy, no padding of x (== torch .view(-1, 784)).
    x = x_nchw.reshape(B, K)

    # Batch tile: full batch if it fits, else block_rows (multiple of 8).
    # Ragged last block (B % TM != 0) is handled by Pallas OOB masking; the
    # padded rows never influence valid rows (row-wise independent matmuls).
    if B <= block_rows:
        TM = B
    else:
        TM = _round_up(block_rows, 16)
    grid = (pl.cdiv(B, TM),)

    flops = 2 * B * (K * Hp + Hp * Np)
    bytes_accessed = (x.size * 4 + w1p.size * 2 + w2p.size * 2
                      + b1p.size * 4 + b2p.size * 4 + B * Np * 2)

    out = pl.pallas_call(
        _ex2net_kernel,
        out_shape=jax.ShapeDtypeStruct((B, Np), jnp.bfloat16),
        grid_spec=pltpu.PrefetchScalarGridSpec(
            num_scalar_prefetch=0,
            grid=grid,
            in_specs=[
                pl.BlockSpec((TM, K), lambda i: (i, 0)),    # x tile streams (f32)
                pl.BlockSpec((K, Hp), lambda i: (0, 0)),    # W1 resident (bf16)
                pl.BlockSpec((1, Hp), lambda i: (0, 0)),    # b1 resident (f32)
                pl.BlockSpec((Hp, Np), lambda i: (0, 0)),   # W2 resident (bf16)
                pl.BlockSpec((1, Np), lambda i: (0, 0)),    # b2 resident (f32)
            ],
            out_specs=pl.BlockSpec((TM, Np), lambda i: (i, 0)),
        ),
        compiler_params=pltpu.CompilerParams(
            dimension_semantics=("parallel",),
        ),
        cost_estimate=pl.CostEstimate(
            flops=flops, transcendentals=0, bytes_accessed=bytes_accessed),
    )(x, w1p, b1p, w2p, b2p)

    # Slice away lane padding; upcast for the caller.
    return out[:, :n_out].astype(jnp.float32)


def init_params(key, hidden_nodes=10):
    """Deterministic init mimicking nn.Linear default (uniform +-1/sqrt(fan_in))."""
    k1, k2, k3, k4 = jax.random.split(key, 4)
    in1, out1 = 28 * 28, hidden_nodes
    in2, out2 = hidden_nodes, 10
    lim1 = 1.0 / jnp.sqrt(jnp.float32(in1))
    lim2 = 1.0 / jnp.sqrt(jnp.float32(in2))
    w1 = jax.random.uniform(k1, (in1, out1), jnp.float32, -lim1, lim1)
    b1 = jax.random.uniform(k2, (out1,), jnp.float32, -lim1, lim1)
    w2 = jax.random.uniform(k3, (in2, out2), jnp.float32, -lim2, lim2)
    b2 = jax.random.uniform(k4, (out2,), jnp.float32, -lim2, lim2)
    return w1, b1, w2, b2


if __name__ == "__main__":
    key = jax.random.PRNGKey(0)
    kx, kp = jax.random.split(key)

    B, hidden_nodes = 2, 10
    x = jax.random.normal(kx, (B, 1, 28, 28), jnp.float32)   # NCHW like PyTorch
    w1, b1, w2, b2 = init_params(kp, hidden_nodes)

    padded_params, n_out = prepare_params(w1, b1, w2, b2)    # one-time prep
    out = ex2net_forward(x, padded_params, n_out)
    out = jax.block_until_ready(out)
    assert out.shape == (B, 10)

    # Tight reference: mirror kernel precision (bf16 operands, f32 accumulate,
    # bf16 hidden re-cast, bf16 output).
    xr = x.reshape(B, 28 * 28)
    x_bf = xr.astype(jnp.bfloat16).astype(jnp.float32)
    w1_bf = w1.astype(jnp.bfloat16).astype(jnp.float32)
    w2_bf = w2.astype(jnp.bfloat16).astype(jnp.float32)
    h_ref = jnp.maximum(x_bf @ w1_bf + b1, 0.0)
    o_ref = jnp.maximum(
        h_ref.astype(jnp.bfloat16).astype(jnp.float32) @ w2_bf + b2, 0.0)
    ref_tight = o_ref.astype(jnp.bfloat16).astype(jnp.float32)
    assert jnp.allclose(out, ref_tight, atol=1e-2, rtol=1e-2)

    # Loose reference: pure f32 forward (bf16 rounding tolerance).
    ref_f32 = jnp.maximum(jnp.maximum(xr @ w1 + b1, 0.0) @ w2 + b2, 0.0)
    assert jnp.allclose(out, ref_f32, atol=7e-2, rtol=7e-2)

    print("KERNEL_OK")
</pallas_src>

<mosaic_0001>
module attributes {stable_mosaic.version = 11 : i64} {
  func.func @_ex2net_kernel(%arg0: i32, %arg1: memref<2x784xf32, #tpu.memory_space<vmem>>, %arg2: memref<784x128xbf16, #tpu.memory_space<vmem>>, %arg3: memref<1x128xf32, #tpu.memory_space<vmem>>, %arg4: memref<128x128xbf16, #tpu.memory_space<vmem>>, %arg5: memref<1x128xf32, #tpu.memory_space<vmem>>, %arg6: memref<2x128xbf16, #tpu.memory_space<vmem>>) attributes {dimension_semantics = [#tpu.dimension_semantics<parallel>], iteration_bounds = array<i64: 1>, scalar_prefetch = 0 : i64, scratch_operands = 0 : i64, tpu.core_type = #tpu.core_type<tc>, window_params = [{transform_indices = @transform_0, window_bounds = array<i64: 2, 784>}, {pipeline_mode = #tpu.pipeline_mode<synchronous>, transform_indices = @transform_1, window_bounds = array<i64: 784, 128>}, {pipeline_mode = #tpu.pipeline_mode<synchronous>, transform_indices = @transform_2, window_bounds = array<i64: 1, 128>}, {pipeline_mode = #tpu.pipeline_mode<synchronous>, transform_indices = @transform_3, window_bounds = array<i64: 128, 128>}, {pipeline_mode = #tpu.pipeline_mode<synchronous>, transform_indices = @transform_4, window_bounds = array<i64: 1, 128>}, {transform_indices = @transform_5, window_bounds = array<i64: 2, 128>}]} {
    %c0 = arith.constant 0 : index
    %c0_0 = arith.constant 0 : index
    %0 = vector.load %arg1[%c0, %c0_0] : memref<2x784xf32, #tpu.memory_space<vmem>>, vector<2x784xf32>
    %1 = arith.truncf %0 : vector<2x784xf32> to vector<2x784xbf16>
    %c0_1 = arith.constant 0 : index
    %c0_2 = arith.constant 0 : index
    %2 = vector.load %arg2[%c0_1, %c0_2] : memref<784x128xbf16, #tpu.memory_space<vmem>>, vector<784x128xbf16>
    %cst = arith.constant dense<0.000000e+00> : vector<2x128xf32>
    %3 = tpu.matmul %1, %2, %cst {dimension_numbers = #tpu.dot_dimension_numbers<[1], [0], [0], [1], [0, 0, 1, 1], [], []>} : vector<2x784xbf16>, vector<784x128xbf16>, vector<2x128xf32> -> vector<2x128xf32>
    %c0_3 = arith.constant 0 : index
    %c0_4 = arith.constant 0 : index
    %4 = vector.load %arg3[%c0_3, %c0_4] : memref<1x128xf32, #tpu.memory_space<vmem>>, vector<1x128xf32>
    %5 = vector.broadcast %4 : vector<1x128xf32> to vector<2x128xf32>
    %6 = arith.addf %3, %5 : vector<2x128xf32>
    %cst_5 = arith.constant 0.000000e+00 : f32
    %7 = vector.broadcast %cst_5 : f32 to vector<2x128xf32>
    %8 = arith.maximumf %6, %7 : vector<2x128xf32>
    %9 = arith.truncf %8 : vector<2x128xf32> to vector<2x128xbf16>
    %c0_6 = arith.constant 0 : index
    %c0_7 = arith.constant 0 : index
    %10 = vector.load %arg4[%c0_6, %c0_7] : memref<128x128xbf16, #tpu.memory_space<vmem>>, vector<128x128xbf16>
    %cst_8 = arith.constant dense<0.000000e+00> : vector<2x128xf32>
    %11 = tpu.matmul %9, %10, %cst_8 {dimension_numbers = #tpu.dot_dimension_numbers<[1], [0], [0], [1], [0, 0, 1, 1], [], []>} : vector<2x128xbf16>, vector<128x128xbf16>, vector<2x128xf32> -> vector<2x128xf32>
    %c0_9 = arith.constant 0 : index
    %c0_10 = arith.constant 0 : index
    %12 = vector.load %arg5[%c0_9, %c0_10] : memref<1x128xf32, #tpu.memory_space<vmem>>, vector<1x128xf32>
    %13 = vector.broadcast %12 : vector<1x128xf32> to vector<2x128xf32>
    %14 = arith.addf %11, %13 : vector<2x128xf32>
    %cst_11 = arith.constant 0.000000e+00 : f32
    %15 = vector.broadcast %cst_11 : f32 to vector<2x128xf32>
    %16 = arith.maximumf %14, %15 : vector<2x128xf32>
    %17 = arith.truncf %16 : vector<2x128xf32> to vector<2x128xbf16>
    %c0_12 = arith.constant 0 : index
    %c0_13 = arith.constant 0 : index
    %18 = vector.load %arg6[%c0_12, %c0_13] : memref<2x128xbf16, #tpu.memory_space<vmem>>, vector<2x128xbf16>
    tpu.vector_store %arg6[%c0_12, %c0_13], %17 {strides = array<i32>} : memref<2x128xbf16, #tpu.memory_space<vmem>>, vector<2x128xbf16>,
    return
  }
  func.func @transform_0(%arg0: i32) -> (i32, i32) {
    %c0_i32 = arith.constant 0 : i32
    %c0_i32_0 = arith.constant 0 : i32
    return %arg0, %c0_i32 : i32, i32
  }
  func.func @transform_1(%arg0: i32) -> (i32, i32) {
    %c0_i32 = arith.constant 0 : i32
    %c0_i32_0 = arith.constant 0 : i32
    %c0_i32_1 = arith.constant 0 : i32
    return %c0_i32, %c0_i32_0 : i32, i32
  }
  func.func @transform_2(%arg0: i32) -> (i32, i32) {
    %c0_i32 = arith.constant 0 : i32
    %c0_i32_0 = arith.constant 0 : i32
    %c0_i32_1 = arith.constant 0 : i32
    return %c0_i32, %c0_i32_0 : i32, i32
  }
  func.func @transform_3(%arg0: i32) -> (i32, i32) {
    %c0_i32 = arith.constant 0 : i32
    %c0_i32_0 = arith.constant 0 : i32
    %c0_i32_1 = arith.constant 0 : i32
    return %c0_i32, %c0_i32_0 : i32, i32
  }
  func.func @transform_4(%arg0: i32) -> (i32, i32) {
    %c0_i32 = arith.constant 0 : i32
    %c0_i32_0 = arith.constant 0 : i32
    %c0_i32_1 = arith.constant 0 : i32
    return %c0_i32, %c0_i32_0 : i32, i32
  }
  func.func @transform_5(%arg0: i32) -> (i32, i32) {
    %c0_i32 = arith.constant 0 : i32
    %c0_i32_0 = arith.constant 0 : i32
    return %arg0, %c0_i32 : i32, i32
  }
}

</mosaic_0001>

<bundles_post_ra>
// kernel: tpu_custom_call.1
= control target key start
LH: loop header
LB: loop body
LE: loop exit
PB: predicated region body
PF: predicated region fallthrough
CT: control target
= control target key end

     0   :  { %10 = vsyncpa [#allocation3], 0  ;;  %s1245_s0 = inlined_call_operand.hbm [shape: f32[2,784], index: 0, kind: input, shape index: {}]   ;;  %s1246_s1 = inlined_call_operand.hbm [shape: bf16[784,128], index: 1, kind: input, shape index: {}]   ;;  %s1247_s2 = inlined_call_operand.vmem [shape: f32[1,128], index: 2, kind: input, shape index: {}]   ;;  %s1248_s3 = inlined_call_operand.hbm [shape: bf16[128,128], index: 3, kind: input, shape index: {}]   ;;  %s1249_s4 = inlined_call_operand.vmem [shape: f32[1,128], index: 4, kind: input, shape index: {}]   ;;  %s1250_s5 = inlined_call_operand.hbm [shape: bf16[2,128], index: 5, kind: output, shape index: {}]  }
   0x1   :  { %11 = vsyncpa [#allocation6], 0 }
   0x2   :  { %12 = vsyncpa [#allocation4], 0  ;;  %s1132_s18 = smov [#allocation5]   ;;  %s1038_s22 = scalar_lea.hbm %s1246_s1, 6272 }
   0x3   :  { %s28_s19 = sshll.u32 %s1132_s18, 4  ;;  %p1039_p0 = scmp.ne.s32.totalorder %s1246_s1, %s1038_s22  ;;  %s29_s19 = int_to_ptr.vmem [resolvable:$true] %s28_s19 }
   0x4   :  { %p1042_p1 = scmp.lt.u32.totalorder %s1038_s22, %s1246_s1 }
   0x6   :  { %p1044_p2 = pnand %p1042_p1, %p1039_p0 }
   0x8   :  { %1047 = shalt.err (!%p1044_p2)
}
   0x9   :  { %s1048_s27 = scalar_lea.vmem %s29_s19, 6272  ;;  %p1053_p4 = scmp.lt.s32.totalorder %s29_s19, %s29_s19 }
   0xa   :  { %p1049_p3 = scmp.ne.s32.totalorder %s29_s19, %s1048_s27  ;;  %p1054_p5 = scmp.lt.s32.totalorder %s1048_s27, %s1048_s27 }
   0xc   :  { %p1055_p6 = por %p1054_p5, %p1053_p4 }
   0xe   :  { %p1056_p7 = pnand %p1055_p6, %p1049_p3 }
  0x10   :  { %1059 = shalt.err (!%p1056_p7)
}
  0x11   :  { %s1133_s28 = smov 64   ;;  %s1134_s29 = smov 4  }
  0x12   :  { %34 = dma.hbm_to_vmem [thread:$0]  %s1246_s1, 6272, %s29_s19, [#allocation6], %s1133_s28, %s1133_s28, %s1134_s29  }
  0x13   :  { %s1135_s7 = smov [#allocation2]   ;;  %s1136_s9 = smov [#allocation7]  }
  0x14   :  { %s19_s8 = sshll.u32 %s1135_s7, 4  ;;  %s42_s10 = sshll.u32 %s1136_s9, 4  ;;  %s20_s8 = int_to_ptr.vmem [resolvable:$true] %s19_s8  ;;  %s43_s10 = int_to_ptr.vmem [resolvable:$true] %s42_s10 }
  0x15   :  { %s1060_s13 = scalar_lea.hbm %s1245_s0, 224 }
  0x16   :  { %p1061_p8 = scmp.ne.s32.totalorder %s1245_s0, %s1060_s13  ;;  %p1064_p9 = scmp.lt.u32.totalorder %s1060_s13, %s1245_s0 }
  0x18   :  { %p1066_p10 = pnand %p1064_p9, %p1061_p8 }
  0x1a   :  { %1069 = shalt.err (!%p1066_p10)
}
  0x1b   :  { %s1070_s1 = scalar_lea.vmem %s20_s8, 224  ;;  %p1075_p12 = scmp.lt.s32.totalorder %s20_s8, %s20_s8 }
  0x1c   :  { %p1071_p11 = scmp.ne.s32.totalorder %s20_s8, %s1070_s1  ;;  %p1076_p13 = scmp.lt.s32.totalorder %s1070_s1, %s1070_s1 }
  0x1e   :  { %p1077_p0 = por %p1076_p13, %p1075_p12 }
  0x20   :  { %p1078_p1 = pnand %p1077_p0, %p1071_p11 }
  0x22   :  { %1081 = shalt.err (!%p1078_p1)
}
  0x23   :  { %22 = dma.hbm_to_vmem [thread:$0]  %s1245_s0, 224, %s20_s8, [#allocation3]  }
  0x24   :  { %s1082_s22 = scalar_lea.hbm %s1248_s3, 1024 }
  0x25   :  { %p1083_p2 = scmp.ne.s32.totalorder %s1248_s3, %s1082_s22  ;;  %p1086_p3 = scmp.lt.u32.totalorder %s1082_s22, %s1248_s3 }
  0x27   :  { %p1088_p4 = pnand %p1086_p3, %p1083_p2 }
  0x29   :  { %1091 = shalt.err (!%p1088_p4)
}
  0x2a   :  { %s1092_s27 = scalar_lea.vmem %s43_s10, 1024  ;;  %p1097_p6 = scmp.lt.s32.totalorder %s43_s10, %s43_s10 }
  0x2b   :  { %p1093_p5 = scmp.ne.s32.totalorder %s43_s10, %s1092_s27  ;;  %p1098_p7 = scmp.lt.s32.totalorder %s1092_s27, %s1092_s27 }
  0x2d   :  { %p1099_p8 = por %p1098_p7, %p1097_p6 }
  0x2f   :  { %p1100_p9 = pnand %p1099_p8, %p1093_p5 }
  0x31   :  { %1103 = shalt.err (!%p1100_p9)
}
  0x32   :  { %48 = dma.hbm_to_vmem [thread:$0]  %s1248_s3, 1024, %s43_s10, [#allocation6], %s1133_s28, %s1133_s28, %s1134_s29  }
  0x33   :  { %1126 = dma.done.wait [#allocation3], 224  }
  0x34   :  { %1127 = vsyncadd [#allocation3], 4294967072 }
  0x35   :  { %1128 = dma.done.wait [#allocation6], 7296  }
  0x36   :  { %1129 = vsyncadd [#allocation6], 4294960000  ;;  %v979_v0 = vld [vmem:[#allocation5 + $0x40] sm:$0xff]   ;;  %v983_v4 = vld [vmem:[#allocation5 + $0x48] sm:$0xff]   ;;  %v1137_v21 = vmov 1983009808   ;;  %v69_v23 = vlaneseq }
  0x37   :  { %v980_v1 = vld [vmem:[#allocation5] sm:$0xff]   ;;  %867 = vmatprep.subr.bf16.mxu0 %v979_v0  ;;  %v984_v5 = vld [vmem:[#allocation5 + $0x8] sm:$0xff]   ;;  %v987_v8 = vld [vmem:[#allocation5 + $0x50] sm:$0xff]   ;;  %v67_v22 = vunpack.c.l.s4 %v1137_v21  ;;  %v1138_v45 = vmov 0.0   ;;  %vm1139_vm0 = vmmov 0   ;;  %vm511_vm1 = vcmask 130048  }
  0x38   :  { %v981_v2 = vld [vmem:[#allocation5 + $0xc0] sm:$0xff]   ;;  %868 = vmatpush3.bf16.msra.mxu0 %v980_v1  ;;  %v985_v6 = vld [vmem:[#allocation5 + $0xc8] sm:$0xff]   ;;  %v988_v9 = vld [vmem:[#allocation5 + $0x10] sm:$0xff]   ;;  %v70_v29 = vshrl.u32 %v69_v23, 7  ;;  %s1140_s6 = smov [#allocation8]  }
  0x39   :  { %v982_v3 = vld [vmem:[#allocation5 + $0x80] sm:$0xff]   ;;  %889 = vmatprep.subr.bf16.mxu1 %v981_v2  ;;  %869 = vmatprep.subr.bf16.mxu0 %v983_v4  ;;  %v986_v7 = vld [vmem:[#allocation5 + $0x88] sm:$0xff]   ;;  %v989_v10 = vld [vmem:[#allocation5 + $0xd0] sm:$0xff]   ;;  %v68_v28 = vunpack.c.0.s8 %v67_v22  ;;  %s797_s7 = sshll.u32 %s1140_s6, 4  ;;  %s798_s7 = int_to_ptr.vmem [resolvable:$true] %s797_s7 }
  0x3a   :  { %890 = vmatpush3.bf16.msra.mxu1 %v982_v3  ;;  %v990_v11 = vld [vmem:[#allocation5 + $0x90] sm:$0xff]   ;;  %v991_v12 = vld [vmem:[#allocation5 + $0x58] sm:$0xff]   ;;  %v995_v16 = vld [vmem:[#allocation5 + $0x60] sm:$0xff]   ;;  %s1104_s8 = scalar_lea.vmem %s798_s7, 16  ;;  %s1108_s9 = scalar_lea.vmem %s798_s7, 32 }
  0x3b   :  { %891 = vmatprep.subr.bf16.mxu1 %v985_v6  ;;  %v992_v13 = vld [vmem:[#allocation5 + $0x18] sm:$0xff]   ;;  %v996_v17 = vld [vmem:[#allocation5 + $0x20] sm:$0xff]   ;;  %v999_v20 = vld [vmem:[#allocation5 + $0x68] sm:$0xff]   ;;  %v71_v34 = vsub.s32 %v68_v28, %v70_v29  ;;  %p1105_p10 = scmp.ne.s32.totalorder %s798_s7, %s1104_s8  ;;  %p1109_p11 = scmp.lt.s32.totalorder %s798_s7, %s798_s7 }
  0x3c   :  { %870 = vmatpush3.bf16.msra.mxu0 %v984_v5  ;;  %v993_v14 = vld [vmem:[#allocation5 + $0xd8] sm:$0xff]   ;;  %v997_v18 = vld [vmem:[#allocation5 + $0xe0] sm:$0xff]   ;;  %v1000_v24 = vld [vmem:[#allocation5 + $0x28] sm:$0xff]   ;;  %p1110_p12 = scmp.lt.s32.totalorder %s1108_s9, %s1104_s8 }
  0x3d   :  { %871 = vmatprep.subr.bf16.mxu0 %v987_v8  ;;  %v994_v15 = vld [vmem:[#allocation5 + $0x98] sm:$0xff]   ;;  %v998_v19 = vld [vmem:[#allocation5 + $0xa0] sm:$0xff]   ;;  %v1001_v25 = vld [vmem:[#allocation5 + $0xe8] sm:$0xff]  }
  0x3e   :  { %892 = vmatpush3.bf16.msra.mxu1 %v986_v7  ;;  %v1002_v26 = vld [vmem:[#allocation5 + $0xa8] sm:$0xff]   ;;  %v1003_v27 = vld [vmem:[#allocation5 + $0x70] sm:$0xff]   ;;  %v1007_v33 = vld [vmem:[#allocation5 + $0x78] sm:$0xff]   ;;  %p1111_p13 = por %p1110_p12, %p1109_p11 }
  0x3f   :  { %893 = vmatprep.subr.bf16.mxu1 %v989_v10  ;;  %v1004_v30 = vld [vmem:[#allocation5 + $0x30] sm:$0xff]   ;;  %v1008_v35 = vld [vmem:[#allocation5 + $0x38] sm:$0xff]   ;;  %v1011_v41 = vld [vmem:[#allocation5 + $0x140] sm:$0xff]  }
  0x40   :  { %872 = vmatpush3.bf16.msra.mxu0 %v988_v9  ;;  %v1005_v31 = vld [vmem:[#allocation5 + $0xf0] sm:$0xff]   ;;  %v1009_v36 = vld [vmem:[#allocation5 + $0xf8] sm:$0xff]   ;;  %v1013_v48 = vld [vmem:[#allocation5 + $0x100] sm:$0xff]   ;;  %p1112_p0 = pnand %p1111_p13, %p1105_p10 }
  0x41   :  { %873 = vmatprep.subr.bf16.mxu0 %v991_v12  ;;  %v1006_v32 = vld [vmem:[#allocation5 + $0xb0] sm:$0xff]   ;;  %v1010_v39 = vld [vmem:[#allocation5 + $0xb8] sm:$0xff]   ;;  %v1014_v50 = vld [vmem:[#allocation5 + $0x148] sm:$0xff]  }
  0x42   :  { %894 = vmatpush3.bf16.msra.mxu1 %v990_v11  ;;  %v61_v37 = vld [vmem:[#allocation2] sm:$0xff]  ;;  %v1015_v52 = vld [vmem:[#allocation5 + $0x108] sm:$0xff]   ;;  %v1020_v57 = vld [vmem:[#allocation5 + $0x160] sm:$0xff]  }
  0x43   :  { %895 = vmatprep.subr.bf16.mxu1 %v993_v14  ;;  %v72_v38 = vrot.slane %v61_v37, %v71_v34  ;;  %v65_v40 = vcombine.high %v61_v37, %v61_v37  ;;  %v1016_v53 = vld [vmem:[#allocation5 + $0x150] sm:$0xff]   ;;  %v1018_v55 = vld [vmem:[#allocation5 + $0x158] sm:$0xff]   ;;  %v1028_v58 = vld [vmem:[#allocation5 + $0x180] sm:$0xff]  }
  0x44   :  { %874 = vmatpush3.bf16.msra.mxu0 %v992_v13  ;;  %v1017_v54 = vld [vmem:[#allocation5 + $0x110] sm:$0xff]   ;;  %v1019_v56 = vld [vmem:[#allocation5 + $0x118] sm:$0xff]   ;;  %v1021_v60 = vld [vmem:[#allocation5 + $0x120] sm:$0xff]  }
  0x45   :  { %875 = vmatprep.subr.bf16.mxu0 %v995_v16  ;;  %v80_v42 = vcombine.high %v72_v38, %v72_v38  ;;  %v79_v43 = vrot.slane %v65_v40, %v71_v34  ;;  %v105_v44 = vpack.c.bf16 %v72_v38, %v72_v38  ;;  %v62_v59 = vld [vmem:[#allocation2 + $0x8] sm:$0x3f]  ;;  %v1022_v63 = vld [vmem:[#allocation5 + $0x168] sm:$0xff]   ;;  %v1024_v5 = vld [vmem:[#allocation5 + $0x170] sm:$0xff]  }
  0x46   :  { %896 = vmatpush3.bf16.msra.mxu1 %v994_v15  ;;  %v82_v61 = vcombine.high %v62_v59, %v62_v59  ;;  %v89_v62 = vrot.slane %v62_v59, %v71_v34  ;;  %v1023_v4 = vld [vmem:[#allocation5 + $0x128] sm:$0xff]   ;;  %v1025_v6 = vld [vmem:[#allocation5 + $0x130] sm:$0xff]   ;;  %v1026_v7 = vld [vmem:[#allocation5 + $0x178] sm:$0xff]  }
  0x47   :  { %897 = vmatprep.subr.bf16.mxu1 %v997_v18  ;;  %v106_v46 = vpack.c.bf16 %v80_v42, %v80_v42  ;;  %v81_v47 = vcombine.high %v79_v43, %v79_v43  ;;  %v107_v49 = vpack.c.bf16 %v79_v43, %v79_v43  ;;  %v1027_v8 = vld [vmem:[#allocation5 + $0x138] sm:$0xff]   ;;  %v1030_v10 = vld [vmem:[#allocation7] sm:$0xff]   ;;  %v1031_v11 = vld [vmem:[#allocation7 + $0x8] sm:$0xff]  }
  0x48   :  { %876 = vmatpush3.bf16.msra.mxu0 %v996_v17  ;;  %v96_v0 = vrot.slane %v82_v61, %v71_v34  ;;  %v97_v1 = vcombine.high %v89_v62, %v89_v62  ;;  %v109_v9 = vpack.c.bf16 %v89_v62, %v89_v62  ;;  %v1032_v12 = vld [vmem:[#allocation7 + $0x10] sm:$0xff]   ;;  %v1033_v13 = vld [vmem:[#allocation7 + $0x18] sm:$0xff]   ;;  %v1034_v14 = vld [vmem:[#allocation7 + $0x20] sm:$0xff]  }
  0x49   :  { %877 = vmatprep.subr.bf16.mxu0 %v999_v20  ;;  %547 = vmatprep.mubr.bf16.mxu0 %v106_v46  ;;  %v108_v51 = vpack.c.bf16 %v81_v47, %v81_v47  ;;  %v1035_v15 = vld [vmem:[#allocation7 + $0x28] sm:$0xff]   ;;  %v1036_v16 = vld [vmem:[#allocation7 + $0x30] sm:$0xff]   ;;  %v1037_v17 = vld [vmem:[#allocation7 + $0x38] sm:$0xff]  }
  0x4a   :  { %898 = vmatpush3.bf16.msra.mxu1 %v998_v19  ;;  %v110_v2 = vpack.c.bf16 %v97_v1, %v97_v1  ;;  %v111_v3 = vpack.c.bf16 %v96_v0, %v96_v0  ;;  %v807_v19 = vld [vmem:[%s1247_s2] ss:$0 sm:$0xff] }
  0x4b   :  { %899 = vmatprep.subr.bf16.mxu1 %v1001_v25  ;;  %587 = vmatprep.mubr.bf16.mxu1 %v108_v51 }
  0x4c   :  { %878 = vmatpush3.bf16.msra.mxu0 %v1000_v24 }
  0x4d   :  { %879 = vmatprep.subr.bf16.mxu0 %v1003_v27 }
  0x4e   :  { %900 = vmatpush3.bf16.msra.mxu1 %v1002_v26 }
  0x4f   :  { %901 = vmatprep.subr.bf16.mxu1 %v1005_v31 }
  0x50   :  { %880 = vmatpush3.bf16.msra.mxu0 %v1004_v30 }
  0x51   :  { %881 = vmatprep.subr.bf16.mxu0 %v1007_v33 }
  0x52   :  { %902 = vmatpush3.bf16.msra.mxu1 %v1006_v32 }
  0x53   :  { %903 = vmatprep.subr.bf16.mxu1 %v1009_v36 }
  0x54   :  { %882 = vmatpush3.bf16.msra.mxu0 %v1008_v35 }
  0x55   :  { %911 = vmatprep.subr.bf16.mxu0 %v1011_v41 }
  0x56   :  { %904 = vmatpush3.bf16.msra.mxu1 %v1010_v39 }
  0x57   :  { %944 = vmatprep.subr.bf16.mxu1 %v1138_v45  ;;  %548 = vmatmul.mubr.bf16.vlgmr.msra.gmra.mrb[0].mxu0 %v105_v44  ;;  %v858_v44 = vld [vmem:[%s1249_s4] ss:$0 sm:$0xff] }
  0x58   :  { %912 = vmatpush3.bf16.msra.mxu0 %v1013_v48  ;;  %627 = vmatprep.mubr.bf16.mxu0 %v110_v2 }
  0x59   :  { %588 = vmatmul.mubr.bf16.vlgmr.msra.gmra.mrb[0].mxu1 %v107_v49  ;;  %913 = vmatprep.subr.bf16.mxu0 %v1014_v50 }
  0x5a   :  { %946 = vmatprep.mubr.msk.bf16.mxu1 %vm1139_vm0, %v1138_v45  ;;  %945 = vmatpush3.bf16.msra.mxu1 %v1028_v58 }
  0x5b   :  { %950 = vmatprep.subr.bf16.mxu1 %v1138_v45 }
  0x5c   :  { %914 = vmatpush3.bf16.msra.mxu0 %v1015_v52 }
  0x5d   :  { %915 = vmatprep.subr.bf16.mxu0 %v1016_v53 }
  0x60   :  { %916 = vmatpush3.bf16.msra.mxu0 %v1017_v54 }
  0x61   :  { %917 = vmatprep.subr.bf16.mxu0 %v1018_v55  ;;  %947 = vmatmul.mubr.msk.bf16.vlgmr.msra.gmra.mrb[4].mxu1 %vm511_vm1, %v111_v3 }
  0x62   :  { %966 = vmatprep.mubr.msk.bf16.mxu1 %vm1139_vm0, %v1138_v45  ;;  %951 = vmatpush3.bf16.msra.mxu1 %v1030_v10 }
  0x63   :  { %952 = vmatprep.subr.bf16.mxu1 %v1138_v45 }
  0x64   :  { %918 = vmatpush3.bf16.msra.mxu0 %v1019_v56 }
  0x65   :  { %919 = vmatprep.subr.bf16.mxu0 %v1020_v57 }
  0x66   :  { %953 = vmatpush3.bf16.msra.mxu1 %v1031_v11 }
  0x67   :  { %954 = vmatprep.subr.bf16.mxu1 %v1138_v45 }
  0x68   :  { %920 = vmatpush3.bf16.msra.mxu0 %v1021_v60 }
  0x69   :  { %921 = vmatprep.subr.bf16.mxu0 %v1022_v63 }
  0x6a   :  { %955 = vmatpush3.bf16.msra.mxu1 %v1032_v12 }
  0x6b   :  { %956 = vmatprep.subr.bf16.mxu1 %v1138_v45 }
  0x6c   :  { %922 = vmatpush3.bf16.msra.mxu0 %v1023_v4 }
  0x6d   :  { %923 = vmatprep.subr.bf16.mxu0 %v1024_v5 }
  0x6e   :  { %957 = vmatpush3.bf16.msra.mxu1 %v1033_v13 }
  0x6f   :  { %958 = vmatprep.subr.bf16.mxu1 %v1138_v45 }
  0x70   :  { %924 = vmatpush3.bf16.msra.mxu0 %v1025_v6 }
  0x71   :  { %925 = vmatprep.subr.bf16.mxu0 %v1026_v7 }
  0x72   :  { %959 = vmatpush3.bf16.msra.mxu1 %v1034_v14 }
  0x73   :  { %960 = vmatprep.subr.bf16.mxu1 %v1138_v45 }
  0x74   :  { %926 = vmatpush3.bf16.msra.mxu0 %v1027_v8 }
  0x76   :  { %961 = vmatpush3.bf16.msra.mxu1 %v1035_v15 }
  0x77   :  { %628 = vmatmul.mubr.bf16.vlgmr.msra.gmra.mrb[4].mxu0 %v109_v9  ;;  %962 = vmatprep.subr.bf16.mxu1 %v1138_v45 }
  0x7a   :  { %963 = vmatpush3.bf16.msra.mxu1 %v1036_v16 }
  0x7b   :  { %964 = vmatprep.subr.bf16.mxu1 %v1138_v45 }
  0x7e   :  { %965 = vmatpush3.bf16.msra.mxu1 %v1037_v17 }
 0x12a   :  { %v883_v18 = vpop.f32.mrb[0].mxu0 }
 0x12b   :  { %v884_v20 = vpop.f32.mrb[1].mxu0 }
 0x12c   :  { %v885_v21 = vadd.f32 %v884_v20, %v883_v18  ;;  %v886_v22 = vpop.f32.mrb[2].mxu0  ;;  %v905_v23 = vpop.f32.mrb[0].mxu1 }
 0x12d   :  { %v887_v24 = vpop.f32.mrb[3].mxu0  ;;  %v906_v25 = vpop.f32.mrb[1].mxu1 }
 0x12e   :  { %v550_v26 = vadd.f32 %v885_v21, %v807_v19  ;;  %v907_v27 = vadd.f32 %v906_v25, %v905_v23  ;;  %v908_v28 = vpop.f32.mrb[2].mxu1 }
 0x12f   :  { %v909_v29 = vpop.f32.mrb[3].mxu1 }
 0x130   :  { %v590_v30 = vadd.f32 %v907_v27, %v550_v26 }
 0x134   :  { %v669_v31 = vpop.f32.mrb[4].mxu1 }
 0x135   :  { %v948_v32 = vpop.f32.mrb[5].mxu1 }
 0x136   :  { %v672_v33 = vpop.f32.mrb[6].mxu1 }
 0x137   :  { %v949_v34 = vpop.f32.mrb[7].mxu1 }
 0x14a   :  { %v927_v35 = vpop.f32.mrb[4].mxu0 }
 0x14b   :  { %v928_v36 = vpop.f32.mrb[5].mxu0 }
 0x14c   :  { %v929_v37 = vadd.f32 %v928_v36, %v927_v35  ;;  %v930_v38 = vpop.f32.mrb[6].mxu0 }
 0x14d   :  { %v931_v39 = vpop.f32.mrb[7].mxu0 }
 0x14e   :  { %v630_v40 = vadd.f32 %v929_v37, %v590_v30 }
 0x150   :  { %v670_v41 = vadd.f32 %v669_v31, %v630_v40 }
 0x152   :  { %v675_v42 = vmax.f32 %v670_v41, 0.0 }
 0x154   :  { %v676_v43 = vpack.c.bf16 %v675_v42, %v675_v42 }
 0x156   :  { %967 = vmatmul.mubr.bf16.vlgmr.msra.gmra.mrb[8].mxu1 %v676_v43 }
 0x229   :  { %v782_v45 = vpop.f32.mrb[8].mxu1 }
 0x22a   :  { %v783_v46 = vadd.f32 %v858_v44, %v782_v45  ;;  %v968_v47 = vpop.f32.mrb[9].mxu1 }
 0x22b   :  { %v785_v48 = vpop.f32.mrb[10].mxu1 }
 0x22c   :  { %v788_v49 = vmax.f32 %v783_v46, 0.0  ;;  %v969_v50 = vpop.f32.mrb[11].mxu1 }
 0x22e   :  { %v789_v51 = vpack.c.bf16 %v788_v49, %v788_v49 }
 0x230   :  { %790 = vst [vmem:[#allocation8] sm:$0x1] %v789_v51 }
 0x231   :  { %1115 = shalt.err (!%p1112_p0)
}
 0x232   :  { %s1116_s11 = scalar_lea.hbm %s1250_s5, 16 }
 0x233   :  { %p1117_p1 = scmp.ne.s32.totalorder %s1250_s5, %s1116_s11  ;;  %p1120_p2 = scmp.lt.u32.totalorder %s1116_s11, %s1250_s5 }
 0x235   :  { %p1122_p3 = pnand %p1120_p2, %p1117_p1 }
 0x237   :  { %1125 = shalt.err (!%p1122_p3)
}
 0x238   :  { %800 = dma.vmem_to_hbm [thread:$0]  %s798_s7, 16, %s1250_s5, [#allocation4]  }
 0x239   :  { %1130 = dma.done.wait [#allocation4], 16  }
 0x23a   :  { %1131 = vsyncadd [#allocation4], 4294967280 }
 0x23b   :  { %804 = vsyncpa [#allocation3], 1 }
 0x23c   :  { %805 = vsyncpa [#allocation6], 1 }
 0x23d   :  { %806 = vsyncpa [#allocation4], 1 }

</bundles_post_ra>
